<compile_context>
chip_gen: v5e
topology: v5e:2x2
jax: 0.10.0
libtpu: 0.0.40
codegen_flags: <defaults>
</compile_context>

<pallas_src>
import math
import jax
import jax.numpy as jnp
from jax.experimental import pallas as pl
from jax.experimental.pallas import tpu as pltpu


_VMEM_LIMIT = 64 * 1024 * 1024      # scoped-VMEM request (cap, not a reservation)
_TILE_BUDGET = 16 * 1024 * 1024     # working-set budget used to size the batch tile


def _round_up(n, m):
    return (n + m - 1) // m * m


# ---------------------------------------------------------------------------
# Kernel
# ---------------------------------------------------------------------------
def encoder_kernel(x_ref, w12_ref, b12_ref, wd_ref, bd_ref,
                   enc1_ref, enc2_ref, dec_ref):
    H_pad = enc1_ref.shape[1]
    x = x_ref[...]

    # Fused projection: one MXU pass produces both encoders' outputs.
    # H_pad % 128 == 0, so the two halves split on a lane boundary.
    enc = (jnp.dot(x, w12_ref[...], preferred_element_type=jnp.float32)
           + b12_ref[...])                              # (tb, 2*H_pad)
    e1 = enc[:, :H_pad]
    e2 = enc[:, H_pad:]

    enc1_ref[...] = e1                                  # lane-dense stores
    enc2_ref[...] = e2

    # decode = (encode1 + encode2) @ Wd_pad + bd_pad  -> lane-dense (tb, In_pad)
    dec_ref[...] = (jnp.dot(e1 + e2, wd_ref[...],
                            preferred_element_type=jnp.float32)
                    + bd_ref[...])


# ---------------------------------------------------------------------------
# Tile selection (VMEM- and megacore-aware)
# ---------------------------------------------------------------------------
def _pick_batch_tile(B, In, H_pad, In_pad):
    f32 = 4
    bytes_per_row = f32 * (In + 2 * H_pad + In_pad)          # x + enc1 + enc2 + dec
    weight_bytes = f32 * ((In + 1) * 2 * H_pad + (H_pad + 1) * In_pad)
    budget = max(_TILE_BUDGET - weight_bytes, 0)
    # Batch-tiled arrays are double-buffered by the pipeline -> factor 2.
    tb = max(8, (budget // (2 * bytes_per_row)) // 8 * 8)

    # Keep the f32 (tb, 2*H_pad) live intermediate within a few hundred KiB so
    # it never spills to VMEM around the second matmul.
    spill_cap = max(128, (512 * 1024) // (8 * H_pad)) // 8 * 8
    tb = min(tb, spill_cap)

    b8 = _round_up(B, 8)
    if b8 >= 16:
        # Leave >=2 grid steps so the "parallel" axis can shard across both
        # TensorCores on v7x (no effect on v5e/v6e correctness or perf).
        tb = min(tb, _round_up(pl.cdiv(b8, 2), 8))
    tb = min(tb, b8)
    return max(8, tb // 8 * 8)


# ---------------------------------------------------------------------------
# Wrapper
# ---------------------------------------------------------------------------
def encoder_forward(x, params):
    """x: (B, input_size) float32.  params in PyTorch nn.Linear layout."""
    B, In = x.shape
    H = params["w1"].shape[0]                  # w1: (hidden, input)  PyTorch layout
    H_pad = _round_up(H, 128)
    In_pad = _round_up(In, 128)

    def pad_cols(a, n):
        return jnp.pad(a, ((0, 0), (0, n - a.shape[-1])))

    # Pre-pack weights once in "x @ W" layout, zero-padded to 128-lane multiples;
    # concatenating the two encoders lets a single MXU matmul compute both.
    w12 = jnp.concatenate([pad_cols(params["w1"].T, H_pad),
                           pad_cols(params["w2"].T, H_pad)], axis=1)        # (In, 2*H_pad)
    b12 = jnp.concatenate([jnp.pad(params["b1"], (0, H_pad - H)),
                           jnp.pad(params["b2"], (0, H_pad - H))])[None, :]  # (1, 2*H_pad)
    wd = jnp.pad(params["wd"].T, ((0, H_pad - H), (0, In_pad - In)))         # (H_pad, In_pad)
    bd = jnp.pad(params["bd"], (0, In_pad - In))[None, :]                    # (1, In_pad)

    tb = _pick_batch_tile(B, In, H_pad, In_pad)
    B_pad = pl.cdiv(B, tb) * tb
    x_p = jnp.pad(x, ((0, B_pad - B), (0, 0))) if B_pad != B else x
    grid = (B_pad // tb,)

    const = lambda i: (0, 0)       # weights/biases: same VMEM block every step
    batched = lambda i: (i, 0)     # batch-tiled arrays

    weight_shapes = [(In, 2 * H_pad), (1, 2 * H_pad), (H_pad, In_pad), (1, In_pad)]

    def run(single_buffer_weights):
        if single_buffer_weights:
            # Grid-invariant operands: one VMEM buffer is enough (constant
            # index_map => DMA'd once); halves their footprint vs. the default
            # double-buffered pipeline.
            w_specs = [pl.BlockSpec(s, const, pipeline_mode=pl.Buffered(1))
                       for s in weight_shapes]
        else:
            w_specs = [pl.BlockSpec(s, const) for s in weight_shapes]

        return pl.pallas_call(
            encoder_kernel,
            out_shape=(jax.ShapeDtypeStruct((B_pad, H_pad), jnp.float32),
                       jax.ShapeDtypeStruct((B_pad, H_pad), jnp.float32),
                       jax.ShapeDtypeStruct((B_pad, In_pad), jnp.float32)),
            grid_spec=pltpu.PrefetchScalarGridSpec(
                num_scalar_prefetch=0,
                grid=grid,
                in_specs=[pl.BlockSpec((tb, In), batched)] + w_specs,
                out_specs=[pl.BlockSpec((tb, H_pad), batched),
                           pl.BlockSpec((tb, H_pad), batched),
                           pl.BlockSpec((tb, In_pad), batched)]),
            compiler_params=pltpu.CompilerParams(
                dimension_semantics=("parallel",),
                vmem_limit_bytes=_VMEM_LIMIT),
        )(x_p, w12, b12, wd, bd)

    try:
        enc1, enc2, dec = run(True)
    except Exception:
        # Older jax without BlockSpec.pipeline_mode / pl.Buffered(1) support:
        # identical kernel, default double-buffered weight specs.
        enc1, enc2, dec = run(False)

    # Slice off batch/feature padding.
    return enc1[:B, :H], enc2[:B, :H], dec[:B, :In]


# ---------------------------------------------------------------------------
# Params + pure-JAX reference (PyTorch semantics)
# ---------------------------------------------------------------------------
def make_params(key, input_size, hidden_size):
    """PyTorch nn.Linear default init: U(-1/sqrt(in), 1/sqrt(in))."""
    ks = jax.random.split(key, 6)

    def u(k, shape, fan_in):
        s = 1.0 / math.sqrt(fan_in)
        return jax.random.uniform(k, shape, jnp.float32, minval=-s, maxval=s)

    I, H = input_size, hidden_size
    return dict(
        w1=u(ks[0], (H, I), I), b1=u(ks[1], (H,), I),
        w2=u(ks[2], (H, I), I), b2=u(ks[3], (H,), I),
        wd=u(ks[4], (I, H), H), bd=u(ks[5], (I,), H),
    )


def encoder_reference(x, params):
    e1 = x @ params["w1"].T + params["b1"]
    e2 = x @ params["w2"].T + params["b2"]
    d = (e1 + e2) @ params["wd"].T + params["bd"]
    return e1, e2, d


if __name__ == "__main__":
    B, INPUT, HIDDEN = 8, 64, 96   # INPUT -> In_pad=128, HIDDEN -> H_pad=128

    key = jax.random.PRNGKey(0)
    kx, kp = jax.random.split(key)
    x = jax.random.normal(kx, (B, INPUT), jnp.float32)
    params = make_params(kp, INPUT, HIDDEN)

    enc1, enc2, dec = encoder_forward(x, params)
    jax.block_until_ready((enc1, enc2, dec))

    r1, r2, rd = encoder_reference(x, params)
    assert enc1.shape == (B, HIDDEN) and enc2.shape == (B, HIDDEN)
    assert dec.shape == (B, INPUT)
    assert jnp.allclose(enc1, r1, atol=1e-5, rtol=1e-5)
    assert jnp.allclose(enc2, r2, atol=1e-5, rtol=1e-5)
    assert jnp.allclose(dec, rd, atol=1e-5, rtol=1e-5)

    print("KERNEL_OK")
</pallas_src>

<mosaic_0001>
module attributes {stable_mosaic.version = 11 : i64} {
  func.func @encoder_kernel(%arg0: i32, %arg1: memref<8x64xf32, #tpu.memory_space<vmem>>, %arg2: memref<64x256xf32, #tpu.memory_space<vmem>>, %arg3: memref<1x256xf32, #tpu.memory_space<vmem>>, %arg4: memref<128x128xf32, #tpu.memory_space<vmem>>, %arg5: memref<1x128xf32, #tpu.memory_space<vmem>>, %arg6: memref<8x128xf32, #tpu.memory_space<vmem>>, %arg7: memref<8x128xf32, #tpu.memory_space<vmem>>, %arg8: memref<8x128xf32, #tpu.memory_space<vmem>>) attributes {dimension_semantics = [#tpu.dimension_semantics<parallel>], iteration_bounds = array<i64: 1>, scalar_prefetch = 0 : i64, scratch_operands = 0 : i64, tpu.core_type = #tpu.core_type<tc>, window_params = [{transform_indices = @transform_0, window_bounds = array<i64: 8, 64>}, {pipeline_mode = #tpu.pipeline_mode<synchronous>, transform_indices = @transform_1, window_bounds = array<i64: 64, 256>}, {pipeline_mode = #tpu.pipeline_mode<synchronous>, transform_indices = @transform_2, window_bounds = array<i64: 1, 256>}, {pipeline_mode = #tpu.pipeline_mode<synchronous>, transform_indices = @transform_3, window_bounds = array<i64: 128, 128>}, {pipeline_mode = #tpu.pipeline_mode<synchronous>, transform_indices = @transform_4, window_bounds = array<i64: 1, 128>}, {transform_indices = @transform_5, window_bounds = array<i64: 8, 128>}, {transform_indices = @transform_6, window_bounds = array<i64: 8, 128>}, {transform_indices = @transform_7, window_bounds = array<i64: 8, 128>}]} {
    %c0 = arith.constant 0 : index
    %c0_0 = arith.constant 0 : index
    %0 = vector.load %arg1[%c0, %c0_0] : memref<8x64xf32, #tpu.memory_space<vmem>>, vector<8x64xf32>
    %c0_1 = arith.constant 0 : index
    %c0_2 = arith.constant 0 : index
    %1 = vector.load %arg2[%c0_1, %c0_2] : memref<64x256xf32, #tpu.memory_space<vmem>>, vector<64x256xf32>
    %cst = arith.constant dense<0.000000e+00> : vector<8x256xf32>
    %2 = tpu.matmul %0, %1, %cst {dimension_numbers = #tpu.dot_dimension_numbers<[1], [0], [0], [1], [0, 0, 1, 1], [], []>} : vector<8x64xf32>, vector<64x256xf32>, vector<8x256xf32> -> vector<8x256xf32>
    %c0_3 = arith.constant 0 : index
    %c0_4 = arith.constant 0 : index
    %3 = vector.load %arg3[%c0_3, %c0_4] : memref<1x256xf32, #tpu.memory_space<vmem>>, vector<1x256xf32>
    %4 = vector.broadcast %3 : vector<1x256xf32> to vector<8x256xf32>
    %5 = arith.addf %2, %4 : vector<8x256xf32>
    %6 = vector.extract_strided_slice %5 {offsets = [0, 0], sizes = [8, 128], strides = [1, 1]} : vector<8x256xf32> to vector<8x128xf32>
    %7 = vector.extract_strided_slice %5 {offsets = [0, 128], sizes = [8, 128], strides = [1, 1]} : vector<8x256xf32> to vector<8x128xf32>
    %c0_5 = arith.constant 0 : index
    %c0_6 = arith.constant 0 : index
    %8 = vector.load %arg6[%c0_5, %c0_6] : memref<8x128xf32, #tpu.memory_space<vmem>>, vector<8x128xf32>
    tpu.vector_store %arg6[%c0_5, %c0_6], %6 {strides = array<i32>} : memref<8x128xf32, #tpu.memory_space<vmem>>, vector<8x128xf32>,
    %c0_7 = arith.constant 0 : index
    %c0_8 = arith.constant 0 : index
    %9 = vector.load %arg7[%c0_7, %c0_8] : memref<8x128xf32, #tpu.memory_space<vmem>>, vector<8x128xf32>
    tpu.vector_store %arg7[%c0_7, %c0_8], %7 {strides = array<i32>} : memref<8x128xf32, #tpu.memory_space<vmem>>, vector<8x128xf32>,
    %10 = arith.addf %6, %7 : vector<8x128xf32>
    %c0_9 = arith.constant 0 : index
    %c0_10 = arith.constant 0 : index
    %11 = vector.load %arg4[%c0_9, %c0_10] : memref<128x128xf32, #tpu.memory_space<vmem>>, vector<128x128xf32>
    %cst_11 = arith.constant dense<0.000000e+00> : vector<8x128xf32>
    %12 = tpu.matmul %10, %11, %cst_11 {dimension_numbers = #tpu.dot_dimension_numbers<[1], [0], [0], [1], [0, 0, 1, 1], [], []>} : vector<8x128xf32>, vector<128x128xf32>, vector<8x128xf32> -> vector<8x128xf32>
    %c0_12 = arith.constant 0 : index
    %c0_13 = arith.constant 0 : index
    %13 = vector.load %arg5[%c0_12, %c0_13] : memref<1x128xf32, #tpu.memory_space<vmem>>, vector<1x128xf32>
    %14 = vector.broadcast %13 : vector<1x128xf32> to vector<8x128xf32>
    %15 = arith.addf %12, %14 : vector<8x128xf32>
    %c0_14 = arith.constant 0 : index
    %c0_15 = arith.constant 0 : index
    %16 = vector.load %arg8[%c0_14, %c0_15] : memref<8x128xf32, #tpu.memory_space<vmem>>, vector<8x128xf32>
    tpu.vector_store %arg8[%c0_14, %c0_15], %15 {strides = array<i32>} : memref<8x128xf32, #tpu.memory_space<vmem>>, vector<8x128xf32>,
    return
  }
  func.func @transform_0(%arg0: i32) -> (i32, i32) {
    %c0_i32 = arith.constant 0 : i32
    %c0_i32_0 = arith.constant 0 : i32
    return %arg0, %c0_i32 : i32, i32
  }
  func.func @transform_1(%arg0: i32) -> (i32, i32) {
    %c0_i32 = arith.constant 0 : i32
    %c0_i32_0 = arith.constant 0 : i32
    %c0_i32_1 = arith.constant 0 : i32
    return %c0_i32, %c0_i32_0 : i32, i32
  }
  func.func @transform_2(%arg0: i32) -> (i32, i32) {
    %c0_i32 = arith.constant 0 : i32
    %c0_i32_0 = arith.constant 0 : i32
    %c0_i32_1 = arith.constant 0 : i32
    return %c0_i32, %c0_i32_0 : i32, i32
  }
  func.func @transform_3(%arg0: i32) -> (i32, i32) {
    %c0_i32 = arith.constant 0 : i32
    %c0_i32_0 = arith.constant 0 : i32
    %c0_i32_1 = arith.constant 0 : i32
    return %c0_i32, %c0_i32_0 : i32, i32
  }
  func.func @transform_4(%arg0: i32) -> (i32, i32) {
    %c0_i32 = arith.constant 0 : i32
    %c0_i32_0 = arith.constant 0 : i32
    %c0_i32_1 = arith.constant 0 : i32
    return %c0_i32, %c0_i32_0 : i32, i32
  }
  func.func @transform_5(%arg0: i32) -> (i32, i32) {
    %c0_i32 = arith.constant 0 : i32
    %c0_i32_0 = arith.constant 0 : i32
    return %arg0, %c0_i32 : i32, i32
  }
  func.func @transform_6(%arg0: i32) -> (i32, i32) {
    %c0_i32 = arith.constant 0 : i32
    %c0_i32_0 = arith.constant 0 : i32
    return %arg0, %c0_i32 : i32, i32
  }
  func.func @transform_7(%arg0: i32) -> (i32, i32) {
    %c0_i32 = arith.constant 0 : i32
    %c0_i32_0 = arith.constant 0 : i32
    return %arg0, %c0_i32 : i32, i32
  }
}

module attributes {stable_mosaic.version = 11 : i64} {
  func.func @encoder_kernel(%arg0: i32, %arg1: memref<8x64xf32, #tpu.memory_space<vmem>>, %arg2: memref<64x256xf32, #tpu.memory_space<vmem>>, %arg3: memref<1x256xf32, #tpu.memory_space<vmem>>, %arg4: memref<128x128xf32, #tpu.memory_space<vmem>>, %arg5: memref<1x128xf32, #tpu.memory_space<vmem>>, %arg6: memref<8x128xf32, #tpu.memory_space<vmem>>, %arg7: memref<8x128xf32, #tpu.memory_space<vmem>>, %arg8: memref<8x128xf32, #tpu.memory_space<vmem>>) attributes {dimension_semantics = [#tpu.dimension_semantics<parallel>], iteration_bounds = array<i64: 1>, scalar_prefetch = 0 : i64, scratch_operands = 0 : i64, tpu.core_type = #tpu.core_type<tc>, window_params = [{transform_indices = @transform_0, window_bounds = array<i64: 8, 64>}, {pipeline_mode = #tpu.pipeline_mode<synchronous>, transform_indices = @transform_1, window_bounds = array<i64: 64, 256>}, {pipeline_mode = #tpu.pipeline_mode<synchronous>, transform_indices = @transform_2, window_bounds = array<i64: 1, 256>}, {pipeline_mode = #tpu.pipeline_mode<synchronous>, transform_indices = @transform_3, window_bounds = array<i64: 128, 128>}, {pipeline_mode = #tpu.pipeline_mode<synchronous>, transform_indices = @transform_4, window_bounds = array<i64: 1, 128>}, {transform_indices = @transform_5, window_bounds = array<i64: 8, 128>}, {transform_indices = @transform_6, window_bounds = array<i64: 8, 128>}, {transform_indices = @transform_7, window_bounds = array<i64: 8, 128>}]} {
    %c0 = arith.constant 0 : index
    %c0_0 = arith.constant 0 : index
    %0 = vector.load %arg1[%c0, %c0_0] : memref<8x64xf32, #tpu.memory_space<vmem>>, vector<8x64xf32>
    %c0_1 = arith.constant 0 : index
    %c0_2 = arith.constant 0 : index
    %1 = vector.load %arg2[%c0_1, %c0_2] : memref<64x256xf32, #tpu.memory_space<vmem>>, vector<64x256xf32>
    %cst = arith.constant dense<0.000000e+00> : vector<8x256xf32>
    %2 = tpu.matmul %0, %1, %cst {dimension_numbers = #tpu.dot_dimension_numbers<[1], [0], [0], [1], [0, 0, 1, 1], [], []>} : vector<8x64xf32>, vector<64x256xf32>, vector<8x256xf32> -> vector<8x256xf32>
    %c0_3 = arith.constant 0 : index
    %c0_4 = arith.constant 0 : index
    %3 = vector.load %arg3[%c0_3, %c0_4] : memref<1x256xf32, #tpu.memory_space<vmem>>, vector<1x256xf32>
    %4 = vector.broadcast %3 : vector<1x256xf32> to vector<8x256xf32>
    %5 = arith.addf %2, %4 : vector<8x256xf32>
    %6 = vector.extract_strided_slice %5 {offsets = [0, 0], sizes = [8, 128], strides = [1, 1]} : vector<8x256xf32> to vector<8x128xf32>
    %7 = vector.extract_strided_slice %5 {offsets = [0, 128], sizes = [8, 128], strides = [1, 1]} : vector<8x256xf32> to vector<8x128xf32>
    %c0_5 = arith.constant 0 : index
    %c0_6 = arith.constant 0 : index
    %8 = vector.load %arg6[%c0_5, %c0_6] : memref<8x128xf32, #tpu.memory_space<vmem>>, vector<8x128xf32>
    tpu.vector_store %arg6[%c0_5, %c0_6], %6 {strides = array<i32>} : memref<8x128xf32, #tpu.memory_space<vmem>>, vector<8x128xf32>,
    %c0_7 = arith.constant 0 : index
    %c0_8 = arith.constant 0 : index
    %9 = vector.load %arg7[%c0_7, %c0_8] : memref<8x128xf32, #tpu.memory_space<vmem>>, vector<8x128xf32>
    tpu.vector_store %arg7[%c0_7, %c0_8], %7 {strides = array<i32>} : memref<8x128xf32, #tpu.memory_space<vmem>>, vector<8x128xf32>,
    %10 = arith.addf %6, %7 : vector<8x128xf32>
    %c0_9 = arith.constant 0 : index
    %c0_10 = arith.constant 0 : index
    %11 = vector.load %arg4[%c0_9, %c0_10] : memref<128x128xf32, #tpu.memory_space<vmem>>, vector<128x128xf32>
    %cst_11 = arith.constant dense<0.000000e+00> : vector<8x128xf32>
    %12 = tpu.matmul %10, %11, %cst_11 {dimension_numbers = #tpu.dot_dimension_numbers<[1], [0], [0], [1], [0, 0, 1, 1], [], []>} : vector<8x128xf32>, vector<128x128xf32>, vector<8x128xf32> -> vector<8x128xf32>
    %c0_12 = arith.constant 0 : index
    %c0_13 = arith.constant 0 : index
    %13 = vector.load %arg5[%c0_12, %c0_13] : memref<1x128xf32, #tpu.memory_space<vmem>>, vector<1x128xf32>
    %14 = vector.broadcast %13 : vector<1x128xf32> to vector<8x128xf32>
    %15 = arith.addf %12, %14 : vector<8x128xf32>
    %c0_14 = arith.constant 0 : index
    %c0_15 = arith.constant 0 : index
    %16 = vector.load %arg8[%c0_14, %c0_15] : memref<8x128xf32, #tpu.memory_space<vmem>>, vector<8x128xf32>
    tpu.vector_store %arg8[%c0_14, %c0_15], %15 {strides = array<i32>} : memref<8x128xf32, #tpu.memory_space<vmem>>, vector<8x128xf32>,
    return
  }
  func.func @transform_0(%arg0: i32) -> (i32, i32) {
    %c0_i32 = arith.constant 0 : i32
    %c0_i32_0 = arith.constant 0 : i32
    return %arg0, %c0_i32 : i32, i32
  }
  func.func @transform_1(%arg0: i32) -> (i32, i32) {
    %c0_i32 = arith.constant 0 : i32
    %c0_i32_0 = arith.constant 0 : i32
    %c0_i32_1 = arith.constant 0 : i32
    return %c0_i32, %c0_i32_0 : i32, i32
  }
  func.func @transform_2(%arg0: i32) -> (i32, i32) {
    %c0_i32 = arith.constant 0 : i32
    %c0_i32_0 = arith.constant 0 : i32
    %c0_i32_1 = arith.constant 0 : i32
    return %c0_i32, %c0_i32_0 : i32, i32
  }
  func.func @transform_3(%arg0: i32) -> (i32, i32) {
    %c0_i32 = arith.constant 0 : i32
    %c0_i32_0 = arith.constant 0 : i32
    %c0_i32_1 = arith.constant 0 : i32
    return %c0_i32, %c0_i32_0 : i32, i32
  }
  func.func @transform_4(%arg0: i32) -> (i32, i32) {
    %c0_i32 = arith.constant 0 : i32
    %c0_i32_0 = arith.constant 0 : i32
    %c0_i32_1 = arith.constant 0 : i32
    return %c0_i32, %c0_i32_0 : i32, i32
  }
  func.func @transform_5(%arg0: i32) -> (i32, i32) {
    %c0_i32 = arith.constant 0 : i32
    %c0_i32_0 = arith.constant 0 : i32
    return %arg0, %c0_i32 : i32, i32
  }
  func.func @transform_6(%arg0: i32) -> (i32, i32) {
    %c0_i32 = arith.constant 0 : i32
    %c0_i32_0 = arith.constant 0 : i32
    return %arg0, %c0_i32 : i32, i32
  }
  func.func @transform_7(%arg0: i32) -> (i32, i32) {
    %c0_i32 = arith.constant 0 : i32
    %c0_i32_0 = arith.constant 0 : i32
    return %arg0, %c0_i32 : i32, i32
  }
}

</mosaic_0001>

<bundles_post_ra>
// kernel: tpu_custom_call.1
= control target key start
LH: loop header
LB: loop body
LE: loop exit
PB: predicated region body
PF: predicated region fallthrough
CT: control target
= control target key end

     0   :  { %13 = vsyncpa [#allocation3], 0  ;;  %s512_s0 = inlined_call_operand.hbm [shape: f32[8,64], index: 0, kind: input, shape index: {}]   ;;  %s513_s1 = inlined_call_operand.hbm [shape: f32[64,256], index: 1, kind: input, shape index: {}]   ;;  %s514_s2 = inlined_call_operand.hbm [shape: f32[1,256], index: 2, kind: input, shape index: {}]   ;;  %s515_s3 = inlined_call_operand.hbm [shape: f32[128,128], index: 3, kind: input, shape index: {}]   ;;  %s516_s4 = inlined_call_operand.vmem [shape: f32[1,128], index: 4, kind: input, shape index: {}]   ;;  %s517_s5 = inlined_call_operand.hbm [shape: f32[8,128], index: 5, kind: output, shape index: {0}]   ;;  %s518_s6 = inlined_call_operand.hbm [shape: f32[8,128], index: 6, kind: output, shape index: {1}]   ;;  %s519_s7 = inlined_call_operand.hbm [shape: f32[8,128], index: 7, kind: output, shape index: {2}]  }
   0x1   :  { %14 = vsyncpa [#allocation6], 0 }
   0x2   :  { %15 = vsyncpa [#allocation9], 0 }
   0x3   :  { %16 = vsyncpa [#allocation4], 0  ;;  %s33_s26 = sshll.u32 %s513_s1, 4  ;;  %s34_s26 = int_to_ptr.hbm [resolvable:$true] %s33_s26 }
   0x4   :  { %17 = vsyncpa [#allocation12], 0  ;;  %s437_s27 = smov [#allocation5]   ;;  %s23_s8 = sshll.u32 %s512_s0, 4  ;;  %s24_s8 = int_to_ptr.hbm [resolvable:$true] %s23_s8 }
   0x5   :  { %s35_s28 = sshll.u32 %s437_s27, 4  ;;  %s438_s9 = smov 256   ;;  %s36_s28 = int_to_ptr.vmem [resolvable:$true] %s35_s28 }
   0x6   :  { %s439_s10 = smov 16   ;;  %s440_s11 = smov [#allocation2]  }
   0x7   :  { %41 = dma.hbm_to_vmem [thread:$0]  %s34_s26, 2048, %s36_s28, [#allocation6], %s438_s9, %s438_s9, %s439_s10  }
   0x8   :  { %s25_s12 = sshll.u32 %s440_s11, 4  ;;  %s47_s15 = sshll.u32 %s514_s2, 4  ;;  %s26_s12 = int_to_ptr.vmem [resolvable:$true] %s25_s12  ;;  %s48_s15 = int_to_ptr.hbm [resolvable:$true] %s47_s15 }
   0x9   :  { %28 = dma.hbm_to_vmem [thread:$0]  %s24_s8, 128, %s26_s12, [#allocation3]  }
   0xa   :  { %s57_s17 = sshll.u32 %s515_s3, 4  ;;  %s441_s18 = smov [#allocation7]   ;;  %s58_s17 = int_to_ptr.hbm [resolvable:$true] %s57_s17 }
   0xb   :  { %s49_s19 = sshll.u32 %s441_s18, 4  ;;  %s442_s0 = smov [#allocation8]   ;;  %s50_s19 = int_to_ptr.vmem [resolvable:$true] %s49_s19 }
   0xc   :  { %52 = dma.hbm_to_vmem [thread:$0]  %s48_s15, 32, %s50_s19, [#allocation6]  }
   0xd   :  { %s59_s20 = sshll.u32 %s442_s0, 4  ;;  %s443_s21 = smov 128   ;;  %s60_s20 = int_to_ptr.vmem [resolvable:$true] %s59_s20 }
   0xe   :  { %s444_s22 = smov 8  }
   0xf   :  { %65 = dma.hbm_to_vmem [thread:$0]  %s58_s17, 2048, %s60_s20, [#allocation9], %s443_s21, %s443_s21, %s444_s22  }
  0x10   :  { %427 = dma.done.wait [#allocation3], 128  }
  0x11   :  { %428 = vsyncadd [#allocation3], 4294967168 }
  0x12   :  { %429 = dma.done.wait [#allocation6], 2080  }
  0x13   :  { %430 = vsyncadd [#allocation6], 4294965216 }
  0x14   :  { %431 = dma.done.wait [#allocation9], 2048  }
  0x15   :  { %432 = vsyncadd [#allocation9], 4294965248  ;;  %v99_v0 = vld [vmem:[#allocation5 + $0x70] sm:$0xff]  ;;  %v100_v1 = vld [vmem:[#allocation5 + $0x78] sm:$0xff]  ;;  %vm107_vm0 = vcmask 523264   ;;  %s445_s2 = smov [#allocation11]  }
  0x16   :  { %v97_v2 = vld [vmem:[#allocation5 + $0x60] sm:$0xff]  ;;  %119 = vmatpush.msra.mxu0 %v99_v0  ;;  %139 = vmatpush.msra.mxu1 %v100_v1  ;;  %v98_v3 = vld [vmem:[#allocation5 + $0x68] sm:$0xff]  ;;  %v95_v4 = vld [vmem:[#allocation5 + $0x50] sm:$0xff]  ;;  %s211_s3 = sshll.u32 %s445_s2, 4  ;;  %s213_s25 = sshll.u32 %s518_s6, 4  ;;  %s212_s3 = int_to_ptr.vmem [resolvable:$true] %s211_s3  ;;  %s214_s25 = int_to_ptr.hbm [resolvable:$true] %s213_s25 }
  0x17   :  { %v96_v5 = vld [vmem:[#allocation5 + $0x58] sm:$0xff]  ;;  %v93_v6 = vld [vmem:[#allocation5 + $0x40] sm:$0xff]  ;;  %v94_v7 = vld [vmem:[#allocation5 + $0x48] sm:$0xff]  ;;  %s202_s28 = sshll.u32 %s517_s5, 4  ;;  %s446_s29 = smov [#allocation10]   ;;  %s203_s28 = int_to_ptr.hbm [resolvable:$true] %s202_s28 }
  0x18   :  { %120 = vmatpush.msra.mxu0 %v97_v2  ;;  %140 = vmatpush.msra.mxu1 %v98_v3  ;;  %v169_v8 = vld [vmem:[#allocation8 + $0x78] sm:$0xff]  ;;  %v91_v9 = vld [vmem:[#allocation5 + $0x30] sm:$0xff]  ;;  %v90_v14 = vld [vmem:[#allocation5 + $0x28] sm:$0xff]  ;;  %s200_s30 = sshll.u32 %s446_s29, 4  ;;  %s447_s10 = smov [#allocation13]   ;;  %s201_s30 = int_to_ptr.vmem [resolvable:$true] %s200_s30 }
  0x19   :  { %v92_v10 = vld [vmem:[#allocation5 + $0x38] sm:$0xff]  ;;  %174 = vmatpush.msra.mxu2 %v169_v8  ;;  %v167_v12 = vld [vmem:[#allocation8 + $0x68] sm:$0xff]  ;;  %v89_v13 = vld [vmem:[#allocation5 + $0x20] sm:$0xff]  ;;  %s222_s11 = sshll.u32 %s447_s10, 4  ;;  %s224_s13 = sshll.u32 %s519_s7, 4  ;;  %s223_s11 = int_to_ptr.vmem [resolvable:$true] %s222_s11  ;;  %s225_s13 = int_to_ptr.hbm [resolvable:$true] %s224_s13 }
  0x1a   :  { %121 = vmatpush.msra.mxu0 %v95_v4  ;;  %141 = vmatpush.msra.mxu1 %v96_v5  ;;  %v168_v11 = vld [vmem:[#allocation8 + $0x70] sm:$0xff]  ;;  %v166_v15 = vld [vmem:[#allocation8 + $0x60] sm:$0xff]  ;;  %v165_v18 = vld [vmem:[#allocation8 + $0x58] sm:$0xff] }
  0x1b   :  { %175 = vmatpush.msra.mxu2 %v168_v11  ;;  %v87_v16 = vld [vmem:[#allocation5 + $0x10] sm:$0xff]  ;;  %v88_v17 = vld [vmem:[#allocation5 + $0x18] sm:$0xff]  ;;  %v85_v19 = vld [vmem:[#allocation5] sm:$0xff] }
  0x1c   :  { %122 = vmatpush.msra.mxu0 %v93_v6  ;;  %142 = vmatpush.msra.mxu1 %v94_v7  ;;  %v86_v20 = vld [vmem:[#allocation5 + $0x8] sm:$0xff]  ;;  %v84_v21 = vld [vmem:[#allocation2] sm:$0xff]  ;;  %v101_v33 = vld [vmem:[#allocation7] sm:$0x3] }
  0x1d   :  { %176 = vmatpush.msra.mxu2 %v167_v12  ;;  %v164_v22 = vld [vmem:[#allocation8 + $0x50] sm:$0xff]  ;;  %v163_v23 = vld [vmem:[#allocation8 + $0x48] sm:$0xff]  ;;  %v162_v24 = vld [vmem:[#allocation8 + $0x40] sm:$0xff]  ;;  %v103_v34 = vperm.slane %v101_v33, 0  ;;  %v104_v35 = vperm.slane %v101_v33, 1 }
  0x1e   :  { %123 = vmatpush.msra.mxu0 %v91_v9  ;;  %143 = vmatpush.msra.mxu1 %v92_v10  ;;  %v161_v25 = vld [vmem:[#allocation8 + $0x38] sm:$0xff]  ;;  %v160_v26 = vld [vmem:[#allocation8 + $0x30] sm:$0xff]  ;;  %v159_v27 = vld [vmem:[#allocation8 + $0x28] sm:$0xff] }
  0x1f   :  { %177 = vmatpush.msra.mxu2 %v166_v15  ;;  %v158_v28 = vld [vmem:[#allocation8 + $0x20] sm:$0xff]  ;;  %v157_v29 = vld [vmem:[#allocation8 + $0x18] sm:$0xff]  ;;  %v156_v30 = vld [vmem:[#allocation8 + $0x10] sm:$0xff] }
  0x20   :  { %124 = vmatpush.msra.mxu0 %v89_v13  ;;  %144 = vmatpush.msra.mxu1 %v90_v14  ;;  %v155_v31 = vld [vmem:[#allocation8 + $0x8] sm:$0xff]  ;;  %v154_v32 = vld [vmem:[#allocation8] sm:$0xff]  ;;  %v258_v41 = vld [vmem:[%s516_s4] ss:$0 sm:$0xff] }
  0x21   :  { %178 = vmatpush.msra.mxu2 %v165_v18 }
  0x22   :  { %125 = vmatpush.msra.mxu0 %v87_v16  ;;  %145 = vmatpush.msra.mxu1 %v88_v17 }
  0x23   :  { %179 = vmatpush.msra.mxu2 %v164_v22 }
  0x24   :  { %126 = vmatpush.msra.mxu0 %v85_v19  ;;  %146 = vmatpush.msra.mxu1 %v86_v20 }
  0x25   :  { %245 = vmatmul.msk.f32.vlgmr.msra.gmra.mxu0 %vm107_vm0, %v84_v21  ;;  %246 = vmatmul.msk.f32.vlgmr.msra.gmra.mxu1 %vm107_vm0, %v84_v21 }
  0x26   :  { %180 = vmatpush.msra.mxu2 %v163_v23 }
  0x28   :  { %181 = vmatpush.msra.mxu2 %v162_v24 }
  0x2a   :  { %182 = vmatpush.msra.mxu2 %v161_v25 }
  0x2c   :  { %183 = vmatpush.msra.mxu2 %v160_v26 }
  0x2e   :  { %184 = vmatpush.msra.mxu2 %v159_v27 }
  0x30   :  { %185 = vmatpush.msra.mxu2 %v158_v28 }
  0x32   :  { %186 = vmatpush.msra.mxu2 %v157_v29 }
  0x34   :  { %187 = vmatpush.msra.mxu2 %v156_v30 }
  0x36   :  { %188 = vmatpush.msra.mxu2 %v155_v31 }
  0x38   :  { %189 = vmatpush.msra.mxu2 %v154_v32 }
  0xa2   :  { %v128_v36 = vpop.f32.mrf.mxu0  ;;  %v148_v37 = vpop.f32.mrf.mxu1 }
  0xa3   :  { %v129_v38 = vadd.f32 %v128_v36, %v103_v34  ;;  %v149_v39 = vadd.f32 %v148_v37, %v104_v35 }
  0xa5   :  { %151 = vst [vmem:[#allocation10] sm:$0xff] %v129_v38  ;;  %v153_v40 = vadd.f32 %v149_v39, %v129_v38 }
  0xa6   :  { %152 = vst [vmem:[#allocation11] sm:$0xff] %v149_v39  ;;  %205 = dma.vmem_to_hbm [thread:$0]  %s201_s30, 128, %s203_s28, [#allocation4]  }
  0xa7   :  { %190 = vmatmul.f32.vlgmr.msra.gmra.mxu2 %v153_v40  ;;  %216 = dma.vmem_to_hbm [thread:$0]  %s212_s3, 128, %s214_s25, [#allocation12]  }
 0x12a   :  { %v191_v42 = vpop.f32.mrf.mxu2 }
 0x12b   :  { %v192_v43 = vadd.f32 %v258_v41, %v191_v42 }
 0x12d   :  { %194 = vst [vmem:[#allocation13] sm:$0xff] %v192_v43 }
 0x12e   :  { %227 = dma.vmem_to_hbm [thread:$0]  %s223_s11, 128, %s225_s13, [#allocation12]  }
 0x12f   :  { %433 = dma.done.wait [#allocation4], 128  }
 0x130   :  { %434 = vsyncadd [#allocation4], 4294967168 }
 0x131   :  { %435 = dma.done.wait [#allocation12], 256  }
 0x132   :  { %436 = vsyncadd [#allocation12], 4294967040 }
 0x133   :  { %240 = vsyncpa [#allocation3], 1 }
 0x134   :  { %241 = vsyncpa [#allocation6], 1 }
 0x135   :  { %242 = vsyncpa [#allocation9], 1 }
 0x136   :  { %243 = vsyncpa [#allocation4], 1 }
 0x137   :  { %244 = vsyncpa [#allocation12], 1 }

// kernel: tpu_custom_call.1
= control target key start
LH: loop header
LB: loop body
LE: loop exit
PB: predicated region body
PF: predicated region fallthrough
CT: control target
= control target key end

     0   :  { %13 = vsyncpa [#allocation3], 0  ;;  %s512_s0 = inlined_call_operand.hbm [shape: f32[8,64], index: 0, kind: input, shape index: {}]   ;;  %s513_s1 = inlined_call_operand.hbm [shape: f32[64,256], index: 1, kind: input, shape index: {}]   ;;  %s514_s2 = inlined_call_operand.hbm [shape: f32[1,256], index: 2, kind: input, shape index: {}]   ;;  %s515_s3 = inlined_call_operand.hbm [shape: f32[128,128], index: 3, kind: input, shape index: {}]   ;;  %s516_s4 = inlined_call_operand.vmem [shape: f32[1,128], index: 4, kind: input, shape index: {}]   ;;  %s517_s5 = inlined_call_operand.hbm [shape: f32[8,128], index: 5, kind: output, shape index: {0}]   ;;  %s518_s6 = inlined_call_operand.hbm [shape: f32[8,128], index: 6, kind: output, shape index: {1}]   ;;  %s519_s7 = inlined_call_operand.hbm [shape: f32[8,128], index: 7, kind: output, shape index: {2}]  }
   0x1   :  { %14 = vsyncpa [#allocation6], 0 }
   0x2   :  { %15 = vsyncpa [#allocation9], 0 }
   0x3   :  { %16 = vsyncpa [#allocation4], 0  ;;  %s33_s26 = sshll.u32 %s513_s1, 4  ;;  %s34_s26 = int_to_ptr.hbm [resolvable:$true] %s33_s26 }
   0x4   :  { %17 = vsyncpa [#allocation12], 0  ;;  %s437_s27 = smov [#allocation5]   ;;  %s23_s8 = sshll.u32 %s512_s0, 4  ;;  %s24_s8 = int_to_ptr.hbm [resolvable:$true] %s23_s8 }
   0x5   :  { %s35_s28 = sshll.u32 %s437_s27, 4  ;;  %s438_s9 = smov 256   ;;  %s36_s28 = int_to_ptr.vmem [resolvable:$true] %s35_s28 }
   0x6   :  { %s439_s10 = smov 16   ;;  %s440_s11 = smov [#allocation2]  }
   0x7   :  { %41 = dma.hbm_to_vmem [thread:$0]  %s34_s26, 2048, %s36_s28, [#allocation6], %s438_s9, %s438_s9, %s439_s10  }
   0x8   :  { %s25_s12 = sshll.u32 %s440_s11, 4  ;;  %s47_s15 = sshll.u32 %s514_s2, 4  ;;  %s26_s12 = int_to_ptr.vmem [resolvable:$true] %s25_s12  ;;  %s48_s15 = int_to_ptr.hbm [resolvable:$true] %s47_s15 }
   0x9   :  { %28 = dma.hbm_to_vmem [thread:$0]  %s24_s8, 128, %s26_s12, [#allocation3]  }
   0xa   :  { %s57_s17 = sshll.u32 %s515_s3, 4  ;;  %s441_s18 = smov [#allocation7]   ;;  %s58_s17 = int_to_ptr.hbm [resolvable:$true] %s57_s17 }
   0xb   :  { %s49_s19 = sshll.u32 %s441_s18, 4  ;;  %s442_s0 = smov [#allocation8]   ;;  %s50_s19 = int_to_ptr.vmem [resolvable:$true] %s49_s19 }
   0xc   :  { %52 = dma.hbm_to_vmem [thread:$0]  %s48_s15, 32, %s50_s19, [#allocation6]  }
   0xd   :  { %s59_s20 = sshll.u32 %s442_s0, 4  ;;  %s443_s21 = smov 128   ;;  %s60_s20 = int_to_ptr.vmem [resolvable:$true] %s59_s20 }
   0xe   :  { %s444_s22 = smov 8  }
   0xf   :  { %65 = dma.hbm_to_vmem [thread:$0]  %s58_s17, 2048, %s60_s20, [#allocation9], %s443_s21, %s443_s21, %s444_s22  }
  0x10   :  { %427 = dma.done.wait [#allocation3], 128  }
  0x11   :  { %428 = vsyncadd [#allocation3], 4294967168 }
  0x12   :  { %429 = dma.done.wait [#allocation6], 2080  }
  0x13   :  { %430 = vsyncadd [#allocation6], 4294965216 }
  0x14   :  { %431 = dma.done.wait [#allocation9], 2048  }
  0x15   :  { %432 = vsyncadd [#allocation9], 4294965248  ;;  %v99_v0 = vld [vmem:[#allocation5 + $0x70] sm:$0xff]  ;;  %v100_v1 = vld [vmem:[#allocation5 + $0x78] sm:$0xff]  ;;  %vm107_vm0 = vcmask 523264   ;;  %s445_s2 = smov [#allocation11]  }
  0x16   :  { %v97_v2 = vld [vmem:[#allocation5 + $0x60] sm:$0xff]  ;;  %119 = vmatpush.msra.mxu0 %v99_v0  ;;  %139 = vmatpush.msra.mxu1 %v100_v1  ;;  %v98_v3 = vld [vmem:[#allocation5 + $0x68] sm:$0xff]  ;;  %v95_v4 = vld [vmem:[#allocation5 + $0x50] sm:$0xff]  ;;  %s211_s3 = sshll.u32 %s445_s2, 4  ;;  %s213_s25 = sshll.u32 %s518_s6, 4  ;;  %s212_s3 = int_to_ptr.vmem [resolvable:$true] %s211_s3  ;;  %s214_s25 = int_to_ptr.hbm [resolvable:$true] %s213_s25 }
  0x17   :  { %v96_v5 = vld [vmem:[#allocation5 + $0x58] sm:$0xff]  ;;  %v93_v6 = vld [vmem:[#allocation5 + $0x40] sm:$0xff]  ;;  %v94_v7 = vld [vmem:[#allocation5 + $0x48] sm:$0xff]  ;;  %s202_s28 = sshll.u32 %s517_s5, 4  ;;  %s446_s29 = smov [#allocation10]   ;;  %s203_s28 = int_to_ptr.hbm [resolvable:$true] %s202_s28 }
  0x18   :  { %120 = vmatpush.msra.mxu0 %v97_v2  ;;  %140 = vmatpush.msra.mxu1 %v98_v3  ;;  %v169_v8 = vld [vmem:[#allocation8 + $0x78] sm:$0xff]  ;;  %v91_v9 = vld [vmem:[#allocation5 + $0x30] sm:$0xff]  ;;  %v90_v14 = vld [vmem:[#allocation5 + $0x28] sm:$0xff]  ;;  %s200_s30 = sshll.u32 %s446_s29, 4  ;;  %s447_s10 = smov [#allocation13]   ;;  %s201_s30 = int_to_ptr.vmem [resolvable:$true] %s200_s30 }
  0x19   :  { %v92_v10 = vld [vmem:[#allocation5 + $0x38] sm:$0xff]  ;;  %174 = vmatpush.msra.mxu2 %v169_v8  ;;  %v167_v12 = vld [vmem:[#allocation8 + $0x68] sm:$0xff]  ;;  %v89_v13 = vld [vmem:[#allocation5 + $0x20] sm:$0xff]  ;;  %s222_s11 = sshll.u32 %s447_s10, 4  ;;  %s224_s13 = sshll.u32 %s519_s7, 4  ;;  %s223_s11 = int_to_ptr.vmem [resolvable:$true] %s222_s11  ;;  %s225_s13 = int_to_ptr.hbm [resolvable:$true] %s224_s13 }
  0x1a   :  { %121 = vmatpush.msra.mxu0 %v95_v4  ;;  %141 = vmatpush.msra.mxu1 %v96_v5  ;;  %v168_v11 = vld [vmem:[#allocation8 + $0x70] sm:$0xff]  ;;  %v166_v15 = vld [vmem:[#allocation8 + $0x60] sm:$0xff]  ;;  %v165_v18 = vld [vmem:[#allocation8 + $0x58] sm:$0xff] }
  0x1b   :  { %175 = vmatpush.msra.mxu2 %v168_v11  ;;  %v87_v16 = vld [vmem:[#allocation5 + $0x10] sm:$0xff]  ;;  %v88_v17 = vld [vmem:[#allocation5 + $0x18] sm:$0xff]  ;;  %v85_v19 = vld [vmem:[#allocation5] sm:$0xff] }
  0x1c   :  { %122 = vmatpush.msra.mxu0 %v93_v6  ;;  %142 = vmatpush.msra.mxu1 %v94_v7  ;;  %v86_v20 = vld [vmem:[#allocation5 + $0x8] sm:$0xff]  ;;  %v84_v21 = vld [vmem:[#allocation2] sm:$0xff]  ;;  %v101_v33 = vld [vmem:[#allocation7] sm:$0x3] }
  0x1d   :  { %176 = vmatpush.msra.mxu2 %v167_v12  ;;  %v164_v22 = vld [vmem:[#allocation8 + $0x50] sm:$0xff]  ;;  %v163_v23 = vld [vmem:[#allocation8 + $0x48] sm:$0xff]  ;;  %v162_v24 = vld [vmem:[#allocation8 + $0x40] sm:$0xff]  ;;  %v103_v34 = vperm.slane %v101_v33, 0  ;;  %v104_v35 = vperm.slane %v101_v33, 1 }
  0x1e   :  { %123 = vmatpush.msra.mxu0 %v91_v9  ;;  %143 = vmatpush.msra.mxu1 %v92_v10  ;;  %v161_v25 = vld [vmem:[#allocation8 + $0x38] sm:$0xff]  ;;  %v160_v26 = vld [vmem:[#allocation8 + $0x30] sm:$0xff]  ;;  %v159_v27 = vld [vmem:[#allocation8 + $0x28] sm:$0xff] }
  0x1f   :  { %177 = vmatpush.msra.mxu2 %v166_v15  ;;  %v158_v28 = vld [vmem:[#allocation8 + $0x20] sm:$0xff]  ;;  %v157_v29 = vld [vmem:[#allocation8 + $0x18] sm:$0xff]  ;;  %v156_v30 = vld [vmem:[#allocation8 + $0x10] sm:$0xff] }
  0x20   :  { %124 = vmatpush.msra.mxu0 %v89_v13  ;;  %144 = vmatpush.msra.mxu1 %v90_v14  ;;  %v155_v31 = vld [vmem:[#allocation8 + $0x8] sm:$0xff]  ;;  %v154_v32 = vld [vmem:[#allocation8] sm:$0xff]  ;;  %v258_v41 = vld [vmem:[%s516_s4] ss:$0 sm:$0xff] }
  0x21   :  { %178 = vmatpush.msra.mxu2 %v165_v18 }
  0x22   :  { %125 = vmatpush.msra.mxu0 %v87_v16  ;;  %145 = vmatpush.msra.mxu1 %v88_v17 }
  0x23   :  { %179 = vmatpush.msra.mxu2 %v164_v22 }
  0x24   :  { %126 = vmatpush.msra.mxu0 %v85_v19  ;;  %146 = vmatpush.msra.mxu1 %v86_v20 }
  0x25   :  { %245 = vmatmul.msk.f32.vlgmr.msra.gmra.mxu0 %vm107_vm0, %v84_v21  ;;  %246 = vmatmul.msk.f32.vlgmr.msra.gmra.mxu1 %vm107_vm0, %v84_v21 }
  0x26   :  { %180 = vmatpush.msra.mxu2 %v163_v23 }
  0x28   :  { %181 = vmatpush.msra.mxu2 %v162_v24 }
  0x2a   :  { %182 = vmatpush.msra.mxu2 %v161_v25 }
  0x2c   :  { %183 = vmatpush.msra.mxu2 %v160_v26 }
  0x2e   :  { %184 = vmatpush.msra.mxu2 %v159_v27 }
  0x30   :  { %185 = vmatpush.msra.mxu2 %v158_v28 }
  0x32   :  { %186 = vmatpush.msra.mxu2 %v157_v29 }
  0x34   :  { %187 = vmatpush.msra.mxu2 %v156_v30 }
  0x36   :  { %188 = vmatpush.msra.mxu2 %v155_v31 }
  0x38   :  { %189 = vmatpush.msra.mxu2 %v154_v32 }
  0xa2   :  { %v128_v36 = vpop.f32.mrf.mxu0  ;;  %v148_v37 = vpop.f32.mrf.mxu1 }
  0xa3   :  { %v129_v38 = vadd.f32 %v128_v36, %v103_v34  ;;  %v149_v39 = vadd.f32 %v148_v37, %v104_v35 }
  0xa5   :  { %151 = vst [vmem:[#allocation10] sm:$0xff] %v129_v38  ;;  %v153_v40 = vadd.f32 %v149_v39, %v129_v38 }
  0xa6   :  { %152 = vst [vmem:[#allocation11] sm:$0xff] %v149_v39  ;;  %205 = dma.vmem_to_hbm [thread:$0]  %s201_s30, 128, %s203_s28, [#allocation4]  }
  0xa7   :  { %190 = vmatmul.f32.vlgmr.msra.gmra.mxu2 %v153_v40  ;;  %216 = dma.vmem_to_hbm [thread:$0]  %s212_s3, 128, %s214_s25, [#allocation12]  }
 0x12a   :  { %v191_v42 = vpop.f32.mrf.mxu2 }
 0x12b   :  { %v192_v43 = vadd.f32 %v258_v41, %v191_v42 }
 0x12d   :  { %194 = vst [vmem:[#allocation13] sm:$0xff] %v192_v43 }
 0x12e   :  { %227 = dma.vmem_to_hbm [thread:$0]  %s223_s11, 128, %s225_s13, [#allocation12]  }
 0x12f   :  { %433 = dma.done.wait [#allocation4], 128  }
 0x130   :  { %434 = vsyncadd [#allocation4], 4294967168 }
 0x131   :  { %435 = dma.done.wait [#allocation12], 256  }
 0x132   :  { %436 = vsyncadd [#allocation12], 4294967040 }
 0x133   :  { %240 = vsyncpa [#allocation3], 1 }
 0x134   :  { %241 = vsyncpa [#allocation6], 1 }
 0x135   :  { %242 = vsyncpa [#allocation9], 1 }
 0x136   :  { %243 = vsyncpa [#allocation4], 1 }
 0x137   :  { %244 = vsyncpa [#allocation12], 1 }

</bundles_post_ra>
